<compile_context>
chip_gen: v7x
topology: tpu7x:2x2x1
jax: 0.10.0
libtpu: 0.0.40
codegen_flags: <defaults>
</compile_context>

<pallas_src>
import functools
import math

import jax
import jax.numpy as jnp
from jax.experimental import pallas as pl
from jax.experimental.pallas import tpu as pltpu

# ---- model hyperparameters (small, consistent with the module) -------------
D_EMB = 32
N_HEADS = 4
D_KEY = 8
D_VAL = 8
N_TOK = 8
BATCH = 2
QKV = 2 * D_KEY + D_VAL          # per-head fused projection width
HK = N_HEADS * D_KEY             # grouped Q (or K) width
HV = N_HEADS * D_VAL             # grouped V width
LN_EPS = 1e-5


def residual_layer_kernel(x_ref, small_ref, qkv_ref, ff2_ref, out_ref, o_sc,
                          *, batch, n_tok):
    """Single invocation over all tokens.  x_ref: (B*T, D) tokens flattened.

    small_ref: (D+2, D)      rows [0:D]  = w3, row D = ln_g, row D+1 = ln_b
    qkv_ref:   (D+1, H*QKV)  rows [0:D]  = w1 (grouped [Q|K|V], Q pre-scaled),
                             row D       = b1 (same layout)
    ff2_ref:   (H*V+1, 2*D)  rows [0:HV] = w2, row HV = b2
    o_sc:      (B*T, H*V)    VMEM scratch for concatenated per-head outputs
    """
    x = x_ref[...]                                            # (B*T, D) f32

    # ---- unpack coalesced parameter slabs (static slices) --------------------
    w3 = small_ref[:D_EMB, :]                                 # (D, D)
    g = small_ref[D_EMB:D_EMB + 1, :]                         # (1, D)
    beta = small_ref[D_EMB + 1:D_EMB + 2, :]                  # (1, D)
    w1 = qkv_ref[:D_EMB, :]                                   # (D, H*QKV)
    b1 = qkv_ref[D_EMB:D_EMB + 1, :]                          # (1, H*QKV)
    w2 = ff2_ref[:HV, :]                                      # (H*V, 2*D)
    b2 = ff2_ref[HV:HV + 1, :]                                # (1, 2*D)

    # ---------------- feedforward1: LayerNorm + fused QKV linear --------------
    mu = jnp.mean(x, axis=-1, keepdims=True)
    var = jnp.mean((x - mu) * (x - mu), axis=-1, keepdims=True)
    xn = (x - mu) * jax.lax.rsqrt(var + LN_EPS) * g + beta    # (B*T, D)

    h = jnp.dot(xn, w1, preferred_element_type=jnp.float32) + b1
    # h: (B*T, H*QKV), columns grouped by the wrapper to [Q_all|K_all|V_all];
    # Q columns already carry the 1/sqrt(d_key) scale.

    # ---------------- causal multi-head attention -----------------------------
    row = jax.lax.broadcasted_iota(jnp.int32, (n_tok, n_tok), 0)
    col = jax.lax.broadcasted_iota(jnp.int32, (n_tok, n_tok), 1)
    causal = col <= row                                       # (T, T)

    for hd in range(N_HEADS):                                 # tiny static unroll
        q = h[:, hd * D_KEY:(hd + 1) * D_KEY].reshape(batch, n_tok, D_KEY)
        k = h[:, HK + hd * D_KEY:HK + (hd + 1) * D_KEY].reshape(batch, n_tok, D_KEY)
        v = h[:, 2 * HK + hd * D_VAL:2 * HK + (hd + 1) * D_VAL].reshape(batch, n_tok, D_VAL)

        s = jnp.einsum("btk,bsk->bts", q, k,
                       preferred_element_type=jnp.float32)    # (B, T, T)
        s = jnp.where(causal, s, -1e30)
        m = jnp.max(s, axis=-1, keepdims=True)
        p = jnp.exp(s - m)
        p = p * pl.reciprocal(jnp.sum(p, axis=-1, keepdims=True), approx=False)
        o = jnp.einsum("bts,bsv->btv", p, v,
                       preferred_element_type=jnp.float32)    # (B, T, V)

        # concatenate per-head outputs in VMEM scratch (static lane offsets)
        o_sc[:, hd * D_VAL:(hd + 1) * D_VAL] = o.reshape(batch * n_tok, D_VAL)

    # ---------------- feedforward2: Linear + GLU + Linear(no bias) -------------
    y = jnp.dot(o_sc[...], w2, preferred_element_type=jnp.float32) + b2
    y = y[:, :D_EMB] * jax.nn.sigmoid(y[:, D_EMB:])           # GLU(dim=-1)
    y = jnp.dot(y, w3, preferred_element_type=jnp.float32)

    # ---------------- residual ----------------
    out_ref[...] = (x + y).astype(out_ref.dtype)


def _qkv_group_perm():
    """Column permutation: PyTorch interleaved [q0 k0 v0 | q1 k1 v1 | ...] ->
    grouped [q0..q3 | k0..k3 | v0..v3]."""
    idx = []
    for off, width in ((0, D_KEY), (D_KEY, D_KEY), (2 * D_KEY, D_VAL)):
        for hd in range(N_HEADS):
            base = hd * QKV
            idx.extend(range(base + off, base + off + width))
    return jnp.asarray(idx, dtype=jnp.int32)


def residual_layer(inp, params):
    """inp: (B, T, D) float32.  params: dict of deterministic weights
    (w1/b1 stored in the PyTorch fused interleaved layout; regrouped + scaled
    here, outside the kernel, so the reference weight layout is untouched)."""
    B, T, D = inp.shape
    g, beta, w1, b1, w2, b2, w3 = (params[k] for k in
                                   ("ln_g", "ln_b", "w1", "b1", "w2", "b2", "w3"))

    # group fused-QKV columns and fold 1/sqrt(d_key) into the Q block (free,
    # one-time XLA ops on weights).
    perm = _qkv_group_perm()
    scale = 1.0 / math.sqrt(D_KEY)
    w1p = w1[:, perm].at[:, :HK].multiply(scale)
    b1p = b1[:, perm].at[:, :HK].multiply(scale)

    # coalesce 7 parameter arrays into 3 slabs -> 4 input DMAs total.
    small = jnp.concatenate([w3, g, beta], axis=0)            # (D+2, D)
    qkv = jnp.concatenate([w1p, b1p], axis=0)                 # (D+1, H*QKV)
    ff2 = jnp.concatenate([w2, b2], axis=0)                   # (H*V+1, 2*D)

    x2 = inp.reshape(B * T, D)                                # free; lane dim = D

    vmem = pl.BlockSpec(memory_space=pltpu.MemorySpace.VMEM)  # whole array in VMEM

    out2 = pl.pallas_call(
        functools.partial(residual_layer_kernel, batch=B, n_tok=T),
        out_shape=jax.ShapeDtypeStruct((B * T, D), inp.dtype),
        in_specs=[vmem, vmem, vmem, vmem],
        out_specs=vmem,
        scratch_shapes=[pltpu.VMEM((B * T, HV), jnp.float32)],
        input_output_aliases={0: 0},                          # reuse token HBM slab
    )(x2, small, qkv, ff2)

    return out2.reshape(B, T, D)


def make_params(key):
    """Deterministic synthetic parameters (weights stored (in, out),
    fused-QKV columns in PyTorch interleaved per-head order)."""
    ks = jax.random.split(key, 5)
    scale = 0.05
    return dict(
        ln_g=jnp.ones((1, D_EMB), jnp.float32),
        ln_b=jnp.zeros((1, D_EMB), jnp.float32),
        w1=scale * jax.random.normal(ks[0], (D_EMB, N_HEADS * QKV), jnp.float32),
        b1=scale * jax.random.normal(ks[1], (1, N_HEADS * QKV), jnp.float32),
        w2=scale * jax.random.normal(ks[2], (N_HEADS * D_VAL, 2 * D_EMB), jnp.float32),
        b2=scale * jax.random.normal(ks[3], (1, 2 * D_EMB), jnp.float32),
        w3=scale * jax.random.normal(ks[4], (D_EMB, D_EMB), jnp.float32),
    )


def reference(inp, p):
    """Pure-JAX reference (uses the original interleaved fused-QKV layout)."""
    mu = jnp.mean(inp, -1, keepdims=True)
    var = jnp.mean((inp - mu) ** 2, -1, keepdims=True)
    xn = (inp - mu) / jnp.sqrt(var + LN_EPS) * p["ln_g"][0] + p["ln_b"][0]
    h = xn @ p["w1"] + p["b1"][0]                              # (B, T, H*QKV)
    B, T, _ = h.shape
    h = h.reshape(B, T, N_HEADS, QKV).transpose(0, 2, 1, 3)    # (B, H, T, QKV)
    q, k, v = h[..., :D_KEY], h[..., D_KEY:2 * D_KEY], h[..., 2 * D_KEY:]
    s = jnp.einsum("bhqd,bhkd->bhqk", q, k) / math.sqrt(D_KEY)
    mask = jnp.tril(jnp.ones((T, T), bool))
    s = jnp.where(mask, s, -1e30)
    pattn = jax.nn.softmax(s, axis=-1)
    o = jnp.einsum("bhqk,bhkd->bhqd", pattn, v)                # (B, H, T, V)
    o = o.transpose(0, 2, 1, 3).reshape(B, T, N_HEADS * D_VAL)
    y = o @ p["w2"] + p["b2"][0]
    y = y[..., :D_EMB] * jax.nn.sigmoid(y[..., D_EMB:])
    y = y @ p["w3"]
    return inp + y


if __name__ == "__main__":
    key = jax.random.PRNGKey(0)
    k_inp, k_par = jax.random.split(key)
    inp = jax.random.normal(k_inp, (BATCH, N_TOK, D_EMB), jnp.float32)
    params = make_params(k_par)

    out = residual_layer(inp, params)
    out = jax.block_until_ready(out)

    ref = reference(inp, params)
    assert out.shape == (BATCH, N_TOK, D_EMB)
    assert bool(jnp.all(jnp.isfinite(out)))
    assert bool(jnp.allclose(out, ref, atol=1e-4, rtol=1e-4))
    print("KERNEL_OK")
</pallas_src>

<mosaic_0001>
module attributes {stable_mosaic.version = 11 : i64} {
  func.func @residual_layer_kernel(%arg0: memref<16x32xf32, #tpu.memory_space<vmem>>, %arg1: memref<34x32xf32, #tpu.memory_space<vmem>>, %arg2: memref<33x96xf32, #tpu.memory_space<vmem>>, %arg3: memref<33x64xf32, #tpu.memory_space<vmem>>, %arg4: memref<16x32xf32, #tpu.memory_space<vmem>>, %arg5: memref<16x32xf32, #tpu.memory_space<vmem>>) attributes {dimension_semantics = [], scalar_prefetch = 0 : i64, scratch_operands = 1 : i64, tpu.core_type = #tpu.core_type<tc>} {
    %c0 = arith.constant 0 : index
    %c0_0 = arith.constant 0 : index
    %0 = vector.load %arg0[%c0, %c0_0] : memref<16x32xf32, #tpu.memory_space<vmem>>, vector<16x32xf32>
    %c0_1 = arith.constant 0 : index
    %c0_2 = arith.constant 0 : index
    %1 = vector.load %arg1[%c0_1, %c0_2] : memref<34x32xf32, #tpu.memory_space<vmem>>, vector<32x32xf32>
    %c32 = arith.constant 32 : index
    %c0_3 = arith.constant 0 : index
    %2 = vector.load %arg1[%c32, %c0_3] : memref<34x32xf32, #tpu.memory_space<vmem>>, vector<1x32xf32>
    %c33 = arith.constant 33 : index
    %c0_4 = arith.constant 0 : index
    %3 = vector.load %arg1[%c33, %c0_4] : memref<34x32xf32, #tpu.memory_space<vmem>>, vector<1x32xf32>
    %c0_5 = arith.constant 0 : index
    %c0_6 = arith.constant 0 : index
    %4 = vector.load %arg2[%c0_5, %c0_6] : memref<33x96xf32, #tpu.memory_space<vmem>>, vector<32x96xf32>
    %c32_7 = arith.constant 32 : index
    %c0_8 = arith.constant 0 : index
    %5 = vector.load %arg2[%c32_7, %c0_8] : memref<33x96xf32, #tpu.memory_space<vmem>>, vector<1x96xf32>
    %c0_9 = arith.constant 0 : index
    %c0_10 = arith.constant 0 : index
    %6 = vector.load %arg3[%c0_9, %c0_10] : memref<33x64xf32, #tpu.memory_space<vmem>>, vector<32x64xf32>
    %c32_11 = arith.constant 32 : index
    %c0_12 = arith.constant 0 : index
    %7 = vector.load %arg3[%c32_11, %c0_12] : memref<33x64xf32, #tpu.memory_space<vmem>>, vector<1x64xf32>
    %cst = arith.constant dense<0.000000e+00> : vector<16xf32>
    %8 = vector.multi_reduction <add>, %0, %cst [1] : vector<16x32xf32> to vector<16xf32>
    %9 = vector.shape_cast %8 : vector<16xf32> to vector<16x1xf32>
    %cst_13 = arith.constant 3.200000e+01 : f32
    %10 = vector.broadcast %cst_13 : f32 to vector<16x1xf32>
    %11 = arith.divf %9, %10 : vector<16x1xf32>
    %12 = vector.broadcast %11 : vector<16x1xf32> to vector<16x32xf32>
    %13 = arith.subf %0, %12 : vector<16x32xf32>
    %14 = vector.broadcast %11 : vector<16x1xf32> to vector<16x32xf32>
    %15 = arith.subf %0, %14 : vector<16x32xf32>
    %16 = arith.mulf %13, %15 : vector<16x32xf32>
    %cst_14 = arith.constant dense<0.000000e+00> : vector<16xf32>
    %17 = vector.multi_reduction <add>, %16, %cst_14 [1] : vector<16x32xf32> to vector<16xf32>
    %18 = vector.shape_cast %17 : vector<16xf32> to vector<16x1xf32>
    %cst_15 = arith.constant 3.200000e+01 : f32
    %19 = vector.broadcast %cst_15 : f32 to vector<16x1xf32>
    %20 = arith.divf %18, %19 : vector<16x1xf32>
    %21 = vector.broadcast %11 : vector<16x1xf32> to vector<16x32xf32>
    %22 = arith.subf %0, %21 : vector<16x32xf32>
    %cst_16 = arith.constant 9.99999974E-6 : f32
    %23 = vector.broadcast %cst_16 : f32 to vector<16x1xf32>
    %24 = arith.addf %20, %23 : vector<16x1xf32>
    %25 = math.rsqrt %24 : vector<16x1xf32>
    %26 = vector.broadcast %25 : vector<16x1xf32> to vector<16x32xf32>
    %27 = arith.mulf %22, %26 : vector<16x32xf32>
    %28 = vector.broadcast %2 : vector<1x32xf32> to vector<16x32xf32>
    %29 = arith.mulf %27, %28 : vector<16x32xf32>
    %30 = vector.broadcast %3 : vector<1x32xf32> to vector<16x32xf32>
    %31 = arith.addf %29, %30 : vector<16x32xf32>
    %cst_17 = arith.constant dense<0.000000e+00> : vector<16x96xf32>
    %32 = tpu.matmul %31, %4, %cst_17 {dimension_numbers = #tpu.dot_dimension_numbers<[1], [0], [0], [1], [0, 0, 1, 1], [], []>} : vector<16x32xf32>, vector<32x96xf32>, vector<16x96xf32> -> vector<16x96xf32>
    %33 = vector.broadcast %5 : vector<1x96xf32> to vector<16x96xf32>
    %34 = arith.addf %32, %33 : vector<16x96xf32>
    %35 = tpu.iota {dimensions = array<i32: 0>} : vector<8x8xi32>
    %36 = tpu.iota {dimensions = array<i32: 1>} : vector<8x8xi32>
    %37 = arith.cmpi sle, %36, %35 : vector<8x8xi32>
    %38 = vector.extract_strided_slice %34 {offsets = [0, 0], sizes = [16, 8], strides = [1, 1]} : vector<16x96xf32> to vector<16x8xf32>
    %39 = vector.shape_cast %38 : vector<16x8xf32> to vector<2x8x8xf32>
    %40 = vector.extract_strided_slice %34 {offsets = [0, 32], sizes = [16, 8], strides = [1, 1]} : vector<16x96xf32> to vector<16x8xf32>
    %41 = vector.shape_cast %40 : vector<16x8xf32> to vector<2x8x8xf32>
    %42 = vector.extract_strided_slice %34 {offsets = [0, 64], sizes = [16, 8], strides = [1, 1]} : vector<16x96xf32> to vector<16x8xf32>
    %43 = vector.shape_cast %42 : vector<16x8xf32> to vector<2x8x8xf32>
    "tpu.trace_start"() <{level = 10 : i32, message = "btk,bsk->bts"}> : () -> ()
    %cst_18 = arith.constant dense<0.000000e+00> : vector<2x8x8xf32>
    %44 = tpu.matmul %39, %41, %cst_18 {dimension_numbers = #tpu.dot_dimension_numbers<[2], [2], [1], [1], [0, 0, 0, 1, 1, 1], [0], [0]>} : vector<2x8x8xf32>, vector<2x8x8xf32>, vector<2x8x8xf32> -> vector<2x8x8xf32>
    %cst_19 = arith.constant -1.000000e+30 : f32
    "tpu.trace_stop"() : () -> ()
    %45 = vector.shape_cast %37 : vector<8x8xi1> to vector<1x8x8xi1>
    %46 = vector.broadcast %45 : vector<1x8x8xi1> to vector<2x8x8xi1>
    %47 = vector.broadcast %cst_19 : f32 to vector<2x8x8xf32>
    %48 = arith.select %46, %44, %47 : vector<2x8x8xi1>, vector<2x8x8xf32>
    %cst_20 = arith.constant dense<0xFF800000> : vector<2x8xf32>
    %49 = vector.multi_reduction <maximumf>, %48, %cst_20 [2] : vector<2x8x8xf32> to vector<2x8xf32>
    %50 = vector.shape_cast %49 : vector<2x8xf32> to vector<2x8x1xf32>
    %51 = vector.broadcast %50 : vector<2x8x1xf32> to vector<2x8x8xf32>
    %52 = arith.subf %48, %51 : vector<2x8x8xf32>
    %53 = math.exp %52 : vector<2x8x8xf32>
    %cst_21 = arith.constant dense<0.000000e+00> : vector<2x8xf32>
    %54 = vector.multi_reduction <add>, %53, %cst_21 [2] : vector<2x8x8xf32> to vector<2x8xf32>
    %55 = vector.shape_cast %54 : vector<2x8xf32> to vector<2x8x1xf32>
    %56 = tpu.reciprocal %55 : vector<2x8x1xf32> -> vector<2x8x1xf32>
    %57 = vector.broadcast %56 : vector<2x8x1xf32> to vector<2x8x8xf32>
    %58 = arith.mulf %53, %57 : vector<2x8x8xf32>
    "tpu.trace_start"() <{level = 10 : i32, message = "bts,bsv->btv"}> : () -> ()
    %cst_22 = arith.constant dense<0.000000e+00> : vector<2x8x8xf32>
    %59 = tpu.matmul %58, %43, %cst_22 {dimension_numbers = #tpu.dot_dimension_numbers<[2], [1], [1], [2], [0, 0, 0, 1, 1, 2], [0], [0]>} : vector<2x8x8xf32>, vector<2x8x8xf32>, vector<2x8x8xf32> -> vector<2x8x8xf32>
    "tpu.trace_stop"() : () -> ()
    %60 = vector.shape_cast %59 : vector<2x8x8xf32> to vector<16x8xf32>
    %c0_23 = arith.constant 0 : index
    %c0_24 = arith.constant 0 : index
    %61 = vector.load %arg5[%c0_23, %c0_24] : memref<16x32xf32, #tpu.memory_space<vmem>>, vector<16x8xf32>
    tpu.vector_store %arg5[%c0_23, %c0_24], %60 {strides = array<i32>} : memref<16x32xf32, #tpu.memory_space<vmem>>, vector<16x8xf32>,
    %62 = vector.extract_strided_slice %34 {offsets = [0, 8], sizes = [16, 8], strides = [1, 1]} : vector<16x96xf32> to vector<16x8xf32>
    %63 = vector.shape_cast %62 : vector<16x8xf32> to vector<2x8x8xf32>
    %64 = vector.extract_strided_slice %34 {offsets = [0, 40], sizes = [16, 8], strides = [1, 1]} : vector<16x96xf32> to vector<16x8xf32>
    %65 = vector.shape_cast %64 : vector<16x8xf32> to vector<2x8x8xf32>
    %66 = vector.extract_strided_slice %34 {offsets = [0, 72], sizes = [16, 8], strides = [1, 1]} : vector<16x96xf32> to vector<16x8xf32>
    %67 = vector.shape_cast %66 : vector<16x8xf32> to vector<2x8x8xf32>
    "tpu.trace_start"() <{level = 10 : i32, message = "btk,bsk->bts"}> : () -> ()
    %cst_25 = arith.constant dense<0.000000e+00> : vector<2x8x8xf32>
    %68 = tpu.matmul %63, %65, %cst_25 {dimension_numbers = #tpu.dot_dimension_numbers<[2], [2], [1], [1], [0, 0, 0, 1, 1, 1], [0], [0]>} : vector<2x8x8xf32>, vector<2x8x8xf32>, vector<2x8x8xf32> -> vector<2x8x8xf32>
    %cst_26 = arith.constant -1.000000e+30 : f32
    "tpu.trace_stop"() : () -> ()
    %69 = vector.shape_cast %37 : vector<8x8xi1> to vector<1x8x8xi1>
    %70 = vector.broadcast %69 : vector<1x8x8xi1> to vector<2x8x8xi1>
    %71 = vector.broadcast %cst_26 : f32 to vector<2x8x8xf32>
    %72 = arith.select %70, %68, %71 : vector<2x8x8xi1>, vector<2x8x8xf32>
    %cst_27 = arith.constant dense<0xFF800000> : vector<2x8xf32>
    %73 = vector.multi_reduction <maximumf>, %72, %cst_27 [2] : vector<2x8x8xf32> to vector<2x8xf32>
    %74 = vector.shape_cast %73 : vector<2x8xf32> to vector<2x8x1xf32>
    %75 = vector.broadcast %74 : vector<2x8x1xf32> to vector<2x8x8xf32>
    %76 = arith.subf %72, %75 : vector<2x8x8xf32>
    %77 = math.exp %76 : vector<2x8x8xf32>
    %cst_28 = arith.constant dense<0.000000e+00> : vector<2x8xf32>
    %78 = vector.multi_reduction <add>, %77, %cst_28 [2] : vector<2x8x8xf32> to vector<2x8xf32>
    %79 = vector.shape_cast %78 : vector<2x8xf32> to vector<2x8x1xf32>
    %80 = tpu.reciprocal %79 : vector<2x8x1xf32> -> vector<2x8x1xf32>
    %81 = vector.broadcast %80 : vector<2x8x1xf32> to vector<2x8x8xf32>
    %82 = arith.mulf %77, %81 : vector<2x8x8xf32>
    "tpu.trace_start"() <{level = 10 : i32, message = "bts,bsv->btv"}> : () -> ()
    %cst_29 = arith.constant dense<0.000000e+00> : vector<2x8x8xf32>
    %83 = tpu.matmul %82, %67, %cst_29 {dimension_numbers = #tpu.dot_dimension_numbers<[2], [1], [1], [2], [0, 0, 0, 1, 1, 2], [0], [0]>} : vector<2x8x8xf32>, vector<2x8x8xf32>, vector<2x8x8xf32> -> vector<2x8x8xf32>
    "tpu.trace_stop"() : () -> ()
    %84 = vector.shape_cast %83 : vector<2x8x8xf32> to vector<16x8xf32>
    %c0_30 = arith.constant 0 : index
    %c8 = arith.constant 8 : index
    %85 = vector.load %arg5[%c0_30, %c8] : memref<16x32xf32, #tpu.memory_space<vmem>>, vector<16x8xf32>
    tpu.vector_store %arg5[%c0_30, %c8], %84 {strides = array<i32>} : memref<16x32xf32, #tpu.memory_space<vmem>>, vector<16x8xf32>,
    %86 = vector.extract_strided_slice %34 {offsets = [0, 16], sizes = [16, 8], strides = [1, 1]} : vector<16x96xf32> to vector<16x8xf32>
    %87 = vector.shape_cast %86 : vector<16x8xf32> to vector<2x8x8xf32>
    %88 = vector.extract_strided_slice %34 {offsets = [0, 48], sizes = [16, 8], strides = [1, 1]} : vector<16x96xf32> to vector<16x8xf32>
    %89 = vector.shape_cast %88 : vector<16x8xf32> to vector<2x8x8xf32>
    %90 = vector.extract_strided_slice %34 {offsets = [0, 80], sizes = [16, 8], strides = [1, 1]} : vector<16x96xf32> to vector<16x8xf32>
    %91 = vector.shape_cast %90 : vector<16x8xf32> to vector<2x8x8xf32>
    "tpu.trace_start"() <{level = 10 : i32, message = "btk,bsk->bts"}> : () -> ()
    %cst_31 = arith.constant dense<0.000000e+00> : vector<2x8x8xf32>
    %92 = tpu.matmul %87, %89, %cst_31 {dimension_numbers = #tpu.dot_dimension_numbers<[2], [2], [1], [1], [0, 0, 0, 1, 1, 1], [0], [0]>} : vector<2x8x8xf32>, vector<2x8x8xf32>, vector<2x8x8xf32> -> vector<2x8x8xf32>
    %cst_32 = arith.constant -1.000000e+30 : f32
    "tpu.trace_stop"() : () -> ()
    %93 = vector.shape_cast %37 : vector<8x8xi1> to vector<1x8x8xi1>
    %94 = vector.broadcast %93 : vector<1x8x8xi1> to vector<2x8x8xi1>
    %95 = vector.broadcast %cst_32 : f32 to vector<2x8x8xf32>
    %96 = arith.select %94, %92, %95 : vector<2x8x8xi1>, vector<2x8x8xf32>
    %cst_33 = arith.constant dense<0xFF800000> : vector<2x8xf32>
    %97 = vector.multi_reduction <maximumf>, %96, %cst_33 [2] : vector<2x8x8xf32> to vector<2x8xf32>
    %98 = vector.shape_cast %97 : vector<2x8xf32> to vector<2x8x1xf32>
    %99 = vector.broadcast %98 : vector<2x8x1xf32> to vector<2x8x8xf32>
    %100 = arith.subf %96, %99 : vector<2x8x8xf32>
    %101 = math.exp %100 : vector<2x8x8xf32>
    %cst_34 = arith.constant dense<0.000000e+00> : vector<2x8xf32>
    %102 = vector.multi_reduction <add>, %101, %cst_34 [2] : vector<2x8x8xf32> to vector<2x8xf32>
    %103 = vector.shape_cast %102 : vector<2x8xf32> to vector<2x8x1xf32>
    %104 = tpu.reciprocal %103 : vector<2x8x1xf32> -> vector<2x8x1xf32>
    %105 = vector.broadcast %104 : vector<2x8x1xf32> to vector<2x8x8xf32>
    %106 = arith.mulf %101, %105 : vector<2x8x8xf32>
    "tpu.trace_start"() <{level = 10 : i32, message = "bts,bsv->btv"}> : () -> ()
    %cst_35 = arith.constant dense<0.000000e+00> : vector<2x8x8xf32>
    %107 = tpu.matmul %106, %91, %cst_35 {dimension_numbers = #tpu.dot_dimension_numbers<[2], [1], [1], [2], [0, 0, 0, 1, 1, 2], [0], [0]>} : vector<2x8x8xf32>, vector<2x8x8xf32>, vector<2x8x8xf32> -> vector<2x8x8xf32>
    "tpu.trace_stop"() : () -> ()
    %108 = vector.shape_cast %107 : vector<2x8x8xf32> to vector<16x8xf32>
    %c0_36 = arith.constant 0 : index
    %c16 = arith.constant 16 : index
    %109 = vector.load %arg5[%c0_36, %c16] : memref<16x32xf32, #tpu.memory_space<vmem>>, vector<16x8xf32>
    tpu.vector_store %arg5[%c0_36, %c16], %108 {strides = array<i32>} : memref<16x32xf32, #tpu.memory_space<vmem>>, vector<16x8xf32>,
    %110 = vector.extract_strided_slice %34 {offsets = [0, 24], sizes = [16, 8], strides = [1, 1]} : vector<16x96xf32> to vector<16x8xf32>
    %111 = vector.shape_cast %110 : vector<16x8xf32> to vector<2x8x8xf32>
    %112 = vector.extract_strided_slice %34 {offsets = [0, 56], sizes = [16, 8], strides = [1, 1]} : vector<16x96xf32> to vector<16x8xf32>
    %113 = vector.shape_cast %112 : vector<16x8xf32> to vector<2x8x8xf32>
    %114 = vector.extract_strided_slice %34 {offsets = [0, 88], sizes = [16, 8], strides = [1, 1]} : vector<16x96xf32> to vector<16x8xf32>
    %115 = vector.shape_cast %114 : vector<16x8xf32> to vector<2x8x8xf32>
    "tpu.trace_start"() <{level = 10 : i32, message = "btk,bsk->bts"}> : () -> ()
    %cst_37 = arith.constant dense<0.000000e+00> : vector<2x8x8xf32>
    %116 = tpu.matmul %111, %113, %cst_37 {dimension_numbers = #tpu.dot_dimension_numbers<[2], [2], [1], [1], [0, 0, 0, 1, 1, 1], [0], [0]>} : vector<2x8x8xf32>, vector<2x8x8xf32>, vector<2x8x8xf32> -> vector<2x8x8xf32>
    %cst_38 = arith.constant -1.000000e+30 : f32
    "tpu.trace_stop"() : () -> ()
    %117 = vector.shape_cast %37 : vector<8x8xi1> to vector<1x8x8xi1>
    %118 = vector.broadcast %117 : vector<1x8x8xi1> to vector<2x8x8xi1>
    %119 = vector.broadcast %cst_38 : f32 to vector<2x8x8xf32>
    %120 = arith.select %118, %116, %119 : vector<2x8x8xi1>, vector<2x8x8xf32>
    %cst_39 = arith.constant dense<0xFF800000> : vector<2x8xf32>
    %121 = vector.multi_reduction <maximumf>, %120, %cst_39 [2] : vector<2x8x8xf32> to vector<2x8xf32>
    %122 = vector.shape_cast %121 : vector<2x8xf32> to vector<2x8x1xf32>
    %123 = vector.broadcast %122 : vector<2x8x1xf32> to vector<2x8x8xf32>
    %124 = arith.subf %120, %123 : vector<2x8x8xf32>
    %125 = math.exp %124 : vector<2x8x8xf32>
    %cst_40 = arith.constant dense<0.000000e+00> : vector<2x8xf32>
    %126 = vector.multi_reduction <add>, %125, %cst_40 [2] : vector<2x8x8xf32> to vector<2x8xf32>
    %127 = vector.shape_cast %126 : vector<2x8xf32> to vector<2x8x1xf32>
    %128 = tpu.reciprocal %127 : vector<2x8x1xf32> -> vector<2x8x1xf32>
    %129 = vector.broadcast %128 : vector<2x8x1xf32> to vector<2x8x8xf32>
    %130 = arith.mulf %125, %129 : vector<2x8x8xf32>
    "tpu.trace_start"() <{level = 10 : i32, message = "bts,bsv->btv"}> : () -> ()
    %cst_41 = arith.constant dense<0.000000e+00> : vector<2x8x8xf32>
    %131 = tpu.matmul %130, %115, %cst_41 {dimension_numbers = #tpu.dot_dimension_numbers<[2], [1], [1], [2], [0, 0, 0, 1, 1, 2], [0], [0]>} : vector<2x8x8xf32>, vector<2x8x8xf32>, vector<2x8x8xf32> -> vector<2x8x8xf32>
    "tpu.trace_stop"() : () -> ()
    %132 = vector.shape_cast %131 : vector<2x8x8xf32> to vector<16x8xf32>
    %c0_42 = arith.constant 0 : index
    %c24 = arith.constant 24 : index
    %133 = vector.load %arg5[%c0_42, %c24] : memref<16x32xf32, #tpu.memory_space<vmem>>, vector<16x8xf32>
    tpu.vector_store %arg5[%c0_42, %c24], %132 {strides = array<i32>} : memref<16x32xf32, #tpu.memory_space<vmem>>, vector<16x8xf32>,
    %c0_43 = arith.constant 0 : index
    %c0_44 = arith.constant 0 : index
    %134 = vector.load %arg5[%c0_43, %c0_44] : memref<16x32xf32, #tpu.memory_space<vmem>>, vector<16x32xf32>
    %cst_45 = arith.constant dense<0.000000e+00> : vector<16x64xf32>
    %135 = tpu.matmul %134, %6, %cst_45 {dimension_numbers = #tpu.dot_dimension_numbers<[1], [0], [0], [1], [0, 0, 1, 1], [], []>} : vector<16x32xf32>, vector<32x64xf32>, vector<16x64xf32> -> vector<16x64xf32>
    %136 = vector.broadcast %7 : vector<1x64xf32> to vector<16x64xf32>
    %137 = arith.addf %135, %136 : vector<16x64xf32>
    %138 = vector.extract_strided_slice %137 {offsets = [0, 0], sizes = [16, 32], strides = [1, 1]} : vector<16x64xf32> to vector<16x32xf32>
    %139 = vector.extract_strided_slice %137 {offsets = [0, 32], sizes = [16, 32], strides = [1, 1]} : vector<16x64xf32> to vector<16x32xf32>
    %140 = arith.negf %139 : vector<16x32xf32>
    %141 = math.exp %140 : vector<16x32xf32>
    %cst_46 = arith.constant 1.000000e+00 : f32
    %142 = vector.broadcast %cst_46 : f32 to vector<16x32xf32>
    %143 = arith.addf %142, %141 : vector<16x32xf32>
    %144 = arith.divf %142, %143 : vector<16x32xf32>
    %145 = arith.mulf %138, %144 : vector<16x32xf32>
    %cst_47 = arith.constant dense<0.000000e+00> : vector<16x32xf32>
    %146 = tpu.matmul %145, %1, %cst_47 {dimension_numbers = #tpu.dot_dimension_numbers<[1], [0], [0], [1], [0, 0, 1, 1], [], []>} : vector<16x32xf32>, vector<32x32xf32>, vector<16x32xf32> -> vector<16x32xf32>
    %147 = arith.addf %0, %146 : vector<16x32xf32>
    %c0_48 = arith.constant 0 : index
    %c0_49 = arith.constant 0 : index
    %148 = vector.load %arg4[%c0_48, %c0_49] : memref<16x32xf32, #tpu.memory_space<vmem>>, vector<16x32xf32>
    tpu.vector_store %arg4[%c0_48, %c0_49], %147 {strides = array<i32>} : memref<16x32xf32, #tpu.memory_space<vmem>>, vector<16x32xf32>,
    return
  }
}

</mosaic_0001>

<bundles_post_ra>
// kernel: tpu_custom_call.1
= control target key start
LH: loop header
LB: loop body
LE: loop exit
PB: predicated region body
PF: predicated region fallthrough
CT: control target
= control target key end

     0   :  { %9 = vsyncpa [#allocation4], 0  ;;  %s2385_s0 = inlined_call_operand.hbm [shape: f32[16,32], index: 0, kind: input, shape index: {}, may-alias: {0,4}]   ;;  %s2386_s1 = inlined_call_operand.vmem [shape: f32[34,32], index: 1, kind: input, shape index: {}]   ;;  %s2387_s2 = inlined_call_operand.vmem [shape: f32[33,96], index: 2, kind: input, shape index: {}]   ;;  %s2388_s3 = inlined_call_operand.vmem [shape: f32[33,64], index: 3, kind: input, shape index: {}]   ;;  %s2389_s4 = inlined_call_operand.hbm [shape: f32[16,32], index: 4, kind: output, shape index: {}, may-alias: {0,4}]  }
   0x1   :  { %10 = vsyncpa [#allocation5], 0  ;;  %s2089_s15 = smov [#allocation3]   ;;  %s2041_s19 = scalar_lea.hbm %s2385_s0, 256 }
   0x2   :  { %s16_s16 = sshll.u32 %s2089_s15, 4  ;;  %p2042_p0 = scmp.ne.s32.totalorder %s2385_s0, %s2041_s19  ;;  %s17_s16 = int_to_ptr.vmem [resolvable:$true] %s16_s16 }
   0x3   :  { %p2045_p1 = scmp.lt.u32.totalorder %s2041_s19, %s2385_s0 }
   0x5   :  { %p2047_p2 = pnand %p2045_p1, %p2042_p0 }
   0x7   :  { %2050 = shalt.err (!%p2047_p2)
}
   0x8   :  { %s2051_s24 = scalar_lea.vmem %s17_s16, 256  ;;  %p2056_p4 = scmp.lt.s32.totalorder %s17_s16, %s17_s16 }
   0x9   :  { %p2052_p3 = scmp.ne.s32.totalorder %s17_s16, %s2051_s24  ;;  %p2057_p5 = scmp.lt.s32.totalorder %s2051_s24, %s2051_s24 }
   0xb   :  { %p2058_p6 = por %p2057_p5, %p2056_p4 }
   0xd   :  { %p2059_p7 = pnand %p2058_p6, %p2052_p3 }
   0xf   :  { %2062 = shalt.err (!%p2059_p7)
}
  0x10   :  { %s2090_s25 = smov 128   ;;  %s2091_s26 = smov 8  }
  0x11   :  { %22 = dma.hbm_to_vmem [thread:$0]  %s2385_s0, 256, %s17_s16, [#allocation4], %s2090_s25, %s2090_s25, %s2091_s26  }
  0x12   :  { %2085 = dma.done.wait [#allocation4], 256  }
  0x13   :  { %2086 = vsyncadd [#allocation4], 4294967040  ;;  %vm50_vm0 = vcmask 261120   ;;  %v2148_v0 = vld [vmem:[#allocation3] sm:$0xff]  ;;  %v2150_v1 = vld [vmem:[#allocation3 + $0x8] sm:$0xff]  ;;  %v2092_v36 = vmov 0.0   ;;  %v175_v44 = vlaneseq }
  0x14   :  { %v51_v2 = vsel %vm50_vm0, %v2148_v0, 0.0  ;;  %v54_v3 = vsel %vm50_vm0, %v2150_v1, 0.0  ;;  %v40_v14 = vld [vmem:[%s2387_s2] sm:$0xff]  ;;  %v41_v15 = vld [vmem:[%s2387_s2 + $0x8] sm:$0xff]  ;;  %v42_v16 = vld [vmem:[%s2387_s2 + $0x10] sm:$0xff]  ;;  %1852 = vmatprep.subr.mxu1 %v2092_v36  ;;  %vm2093_vm1 = vmmov 0  }
  0x15   :  { %52 = vadd.xlane.f32.xlu0 %v51_v2  ;;  %v1954_v17 = vpack.c.bf16 %v41_v15, %v40_v14  ;;  %v43_v18 = vld [vmem:[%s2387_s2 + $0x18] sm:$0xff]  ;;  %v1755_v27 = vld [vmem:[%s2386_s1 + $0x20] ss:$0 sm:$0xff]  ;;  %v1756_v29 = vld [vmem:[%s2386_s1 + $0x21] ss:$0 sm:$0xff]  ;;  %1854 = vmatprep.mubr.msk.f32.mxu1 %vm2093_vm1, %v2092_v36  ;;  %s2094_s16 = smov 96  }
  0x16   :  { %v1958_v19 = vpack.c.bf16 %v43_v18, %v42_v16  ;;  %v1757_v37 = vld [vmem:[%s2387_s2 + $0x20] ss:$0 sm:$0xff]  ;;  %vm183_vm2 = vcmask 64512   ;;  %v176_v45 = vshrl.u32 %v175_v44, 7  ;;  %v178_v46 = vand.u32 127, %v175_v44  ;;  %s2095_s2 = smov 64  }
  0x17   :  { %1955 = vmatprep.subr.bf16.mxu0 %v1954_v17  ;;  %s2096_s17 = smov 88   ;;  %s2097_s18 = smov 120   ;;  %vm855_vm4 = vcmask 130112   ;;  %vm1198_vm5 = vcmask 195712   ;;  %vm1541_vm6 = vcmask 261312  }
  0x18   :  { %1957 = vmatpush3.bf16.msra.mxu0 %v1954_v17  ;;  %vm2209_vm3 = vcmp.le.s32.totalorder %v178_v46, %v176_v45  ;;  %s2098_s19 = smov 56   ;;  %s2099_s20 = smov 80  }
  0x19   :  { %55 = vadd.xlane.f32.xlu0 %v54_v3  ;;  %1959 = vmatprep.subr.bf16.mxu0 %v1958_v19  ;;  %s2100_s21 = smov 112   ;;  %s2101_s22 = smov 48  }
  0x1a   :  { %s2102_s23 = smov 72   ;;  %s2103_s24 = smov 104  }
  0x1b   :  { %s2104_s27 = smov 40   ;;  %s2105_s28 = smov 16  }
  0x1c   :  { %1961 = vmatpush3.bf16.msra.mxu0 %v1958_v19  ;;  %s2106_s10 = smov 24  }
  0x1d   :  { %1862 = vmatprep.subr.mxu0 %v2092_v36 }
  0xa2   :  { %v53_v4 = vpop.xlane.xlu0 %52 }
  0xa3   :  { %v58_v5 = vmul.f32 0.03125, %v53_v4 }
  0xa5   :  { %v60_v6 = vsub.f32 %v2148_v0, %v58_v5 }
  0xa6   :  { %v56_v7 = vpop.xlane.xlu0 %55 }
  0xa7   :  { %v59_v8 = vmul.f32 0.03125, %v56_v7  ;;  %v62_v9 = vmul.f32 %v60_v6, %v60_v6 }
  0xa9   :  { %v61_v10 = vsub.f32 %v2150_v1, %v59_v8  ;;  %v64_v11 = vsel %vm50_vm0, %v62_v9, 0.0 }
  0xaa   :  { %65 = vadd.xlane.f32.xlu1 %v64_v11 }
  0xab   :  { %v63_v12 = vmul.f32 %v61_v10, %v61_v10 }
  0xad   :  { %v67_v13 = vsel %vm50_vm0, %v63_v12, 0.0 }
  0xae   :  { %68 = vadd.xlane.f32.xlu1 %v67_v13 }
 0x137   :  { %v66_v20 = vpop.xlane.xlu1 %65 }
 0x138   :  { %v70_v21 = vmul.f32 0.03125, %v66_v20 }
 0x13a   :  { %v72_v22 = vadd.f32 1e-05, %v70_v21 }
 0x13b   :  { %v69_v23 = vpop.xlane.xlu1 %68 }
 0x13c   :  { %1997 = vrsqrt.f32 %v72_v22  ;;  %v71_v24 = vmul.f32 0.03125, %v69_v23 }
 0x13e   :  { %v73_v25 = vadd.f32 1e-05, %v71_v24 }
 0x140   :  { %1999 = vrsqrt.f32 %v73_v25 }
 0x146   :  { %v1998_v26 = vpop.eup %1997 }
 0x147   :  { %v76_v28 = vmul.f32 %v1998_v26, %v60_v6 }
 0x149   :  { %v82_v30 = vmul.f32 %v1755_v27, %v76_v28 }
 0x14a   :  { %v2000_v31 = vpop.eup %1999 }
 0x14b   :  { %v77_v32 = vmul.f32 %v2000_v31, %v61_v10  ;;  %v88_v33 = vadd.f32 %v1756_v29, %v82_v30 }
 0x14d   :  { %v83_v34 = vmul.f32 %v1755_v27, %v77_v32  ;;  %1849 = vmatprep.mubr.msk.f32.mxu0 %vm50_vm0, %v88_v33 }
 0x14f   :  { %v89_v35 = vadd.f32 %v1756_v29, %v83_v34 }
 0x151   :  { %1850 = vmatmul.mubr.msk.f32.vlgmr.msra.gmra.mrb[0].mxu0 %vm50_vm0, %v89_v35 }
 0x152   :  { %1864 = vmatprep.mubr.msk.f32.mxu0 %vm2093_vm1, %v2092_v36 }
 0x224   :  { %v1851_v38 = vpop.f32.mrb[0].mxu0 }
 0x225   :  { %v2189_v39 = vadd.f32 %v1851_v38, %v1757_v37  ;;  %v166_v40 = vpop.f32.mrb[1].mxu0 }
 0x226   :  { %v2191_v41 = vadd.f32 %v1757_v37, %v166_v40 }
 0x227   :  { %259 = vrot.lane.b32.xlu1 %v2189_v39, %s2094_s16 }
 0x228   :  { %181 = vrot.lane.b32.xlu0 %v2191_v41, %s2094_s16 }
 0x299   :  { %v260_v43 = vpop.permute.xlu1 %259 }
 0x29a   :  { %v182_v42 = vpop.permute.xlu0 %181 }
 0x29b   :  { %1853 = vmatpush3.xpose.msk.msra.mxu1 %vm183_vm2, %v182_v42 }
 0x29c   :  { %1857 = vmatprep.subr.mxu1 %v2092_v36 }
 0x29e   :  { %1855 = vmatmul.mubr.msk.f32.vlgmr.msra.gmra.mrb[0].mxu1 %vm183_vm2, %v2191_v41 }
 0x29f   :  { %1858 = vmatpush3.xpose.msk.msra.mxu1 %vm183_vm2, %v260_v43  ;;  %1859 = vmatprep.mubr.msk.f32.mxu1 %vm2093_vm1, %v2092_v36 }
 0x2a0   :  { %1867 = vmatprep.subr.mxu1 %v2092_v36 }
 0x2a2   :  { %1860 = vmatmul.mubr.msk.f32.vlgmr.msra.gmra.mrb[2].mxu1 %vm183_vm2, %v2189_v39 }
 0x2a3   :  { %1869 = vmatprep.mubr.msk.f32.mxu1 %vm2093_vm1, %v2092_v36 }
 0x371   :  { %v254_v48 = vpop.f32.mrb[0].mxu1 }
 0x372   :  { %v337_v49 = vsel %vm2209_vm3, %v254_v48, -1e+30  ;;  %v1856_v50 = vpop.f32.mrb[1].mxu1 }
 0x373   :  { %v339_v51 = vsel %vm183_vm2, %v337_v49, -inf }
 0x374   :  { %340 = vmax.xlane.f32.xlu1 %v339_v51 }
 0x375   :  { %v331_v52 = vpop.f32.mrb[2].mxu1 }
 0x376   :  { %v338_v53 = vsel %vm2209_vm3, %v331_v52, -1e+30  ;;  %v1861_v54 = vpop.f32.mrb[3].mxu1 }
 0x377   :  { %v342_v55 = vsel %vm183_vm2, %v338_v53, -inf }
 0x378   :  { %343 = vmax.xlane.f32.xlu0 %v342_v55 }
 0x385   :  { %437 = vrot.lane.b32.xlu1 %v2189_v39, %s2095_s2 }
 0x389   :  { %517 = vrot.lane.b32.xlu1 %v2191_v41, %s2096_s17 }
 0x38d   :  { %595 = vrot.lane.b32.xlu1 %v2189_v39, %s2096_s17 }
 0x38e   :  { %361 = vrot.lane.b32.xlu0 %v2191_v41, %s2095_s2 }
 0x401   :  { %v341_v56 = vpop.xlane.xlu1 %340 }
 0x402   :  { %v345_v57 = vsub.f32 %v337_v49, %v341_v56 }
 0x404   :  { %v347_v58 = vmul.f32 1.442695, %v345_v57 }
 0x405   :  { %v438_v59 = vpop.permute.xlu1 %437  ;;  %v344_v60 = vpop.xlane.xlu0 %343 }
 0x406   :  { %2001 = vpow2.f32 %v347_v58  ;;  %v346_v61 = vsub.f32 %v338_v53, %v344_v60  ;;  %1868 = vmatpush3.msra.mxu1 %v438_v59 }
 0x407   :  { %1877 = vmatprep.subr.mxu1 %v2092_v36 }
 0x408   :  { %v349_v62 = vmul.f32 1.442695, %v346_v61 }
 0x409   :  { %v362_v63 = vpop.permute.xlu0 %361  ;;  %v518_v6 = vpop.permute.xlu1 %517 }
 0x40a   :  { %2003 = vpow2.f32 %v349_v62  ;;  %1863 = vmatpush3.msra.mxu0 %v362_v63 }
 0x40b   :  { %1872 = vmatprep.subr.mxu0 %v2092_v36 }
 0x40d   :  { %v596_v7 = vpop.permute.xlu1 %595 }
 0x410   :  { %v2002_v2 = vpop.eup %2001 }
 0x411   :  { %v351_v3 = vsel %vm183_vm2, %v2002_v2, 0.0 }
 0x412   :  { %352 = vadd.xlane.f32.xlu0 %v351_v3 }
 0x414   :  { %v2004_v4 = vpop.eup %2003 }
 0x415   :  { %v354_v5 = vsel %vm183_vm2, %v2004_v4, 0.0 }
 0x416   :  { %355 = vadd.xlane.f32.xlu1 %v354_v5 }
 0x427   :  { %593 = vrot.lane.b32.xlu1 %v2189_v39, %s2097_s18 }
 0x428   :  { %515 = vrot.lane.b32.xlu0 %v2191_v41, %s2097_s18 }
 0x49f   :  { %v353_v8 = vpop.xlane.xlu0 %352 }
 0x4a0   :  { %2005 = vrcp.f32 %v353_v8 }
 0x4a3   :  { %v356_v9 = vpop.xlane.xlu1 %355  ;;  %v516_v14 = vpop.permute.xlu0 %515 }
 0x4a4   :  { %2007 = vrcp.f32 %v356_v9 }
 0x4a7   :  { %v594_v15 = vpop.permute.xlu1 %593 }
 0x4aa   :  { %v2006_v10 = vpop.eup %2005 }
 0x4ab   :  { %v359_v11 = vmul.f32 %v2006_v10, %v2002_v2 }
 0x4ad   :  { %1865 = vmatmul.mubr.msk.f32.vlgmr.msra.gmra.mrb[2].mxu0 %vm183_vm2, %v359_v11 }
 0x4ae   :  { %v2008_v12 = vpop.eup %2007  ;;  %1873 = vmatpush3.xpose.msk.msra.mxu0 %vm183_vm2, %v518_v6  ;;  %1874 = vmatprep.mubr.msk.f32.mxu0 %vm2093_vm1, %v2092_v36 }
 0x4af   :  { %v360_v13 = vmul.f32 %v2008_v12, %v2004_v4  ;;  %1882 = vmatprep.subr.mxu0 %v2092_v36 }
 0x4b1   :  { %1870 = vmatmul.mubr.msk.f32.vlgmr.msra.gmra.mrb[4].mxu1 %vm183_vm2, %v360_v13  ;;  %1875 = vmatmul.mubr.msk.f32.vlgmr.msra.gmra.mrb[4].mxu0 %vm183_vm2, %v516_v14 }
 0x4b2   :  { %1878 = vmatpush3.xpose.msk.msra.mxu1 %vm183_vm2, %v596_v7  ;;  %1879 = vmatprep.mubr.msk.f32.mxu1 %vm2093_vm1, %v2092_v36 }
 0x4b3   :  { %1887 = vmatprep.subr.mxu1 %v2092_v36  ;;  %1884 = vmatprep.mubr.msk.f32.mxu0 %vm2093_vm1, %v2092_v36 }
 0x4b5   :  { %1880 = vmatmul.mubr.msk.f32.vlgmr.msra.gmra.mrb[6].mxu1 %vm183_vm2, %v594_v15 }
 0x4b6   :  { %1889 = vmatprep.mubr.msk.f32.mxu1 %vm2093_vm1, %v2092_v36 }
 0x580   :  { %v433_v16 = vpop.f32.mrb[2].mxu0 }
 0x581   :  { %513 = vst.msk [vmem:[#allocation2] sm:$0xff] %vm183_vm2, %v433_v16  ;;  %v1866_v17 = vpop.f32.mrb[3].mxu0 }
 0x584   :  { %v509_v18 = vpop.f32.mrb[4].mxu1  ;;  %v589_v19 = vpop.f32.mrb[4].mxu0 }
 0x585   :  { %514 = vst.msk [vmem:[#allocation2 + $0x8] sm:$0xff] %vm183_vm2, %v509_v18  ;;  %v671_v20 = vsel %vm2209_vm3, %v589_v19, -1e+30  ;;  %v1871_v21 = vpop.f32.mrb[5].mxu1  ;;  %v1876_v22 = vpop.f32.mrb[5].mxu0 }
 0x586   :  { %v673_v23 = vsel %vm183_vm2, %v671_v20, -inf }
 0x587   :  { %674 = vmax.xlane.f32.xlu0 %v673_v23 }
 0x588   :  { %v667_v24 = vpop.f32.mrb[6].mxu1 }
 0x589   :  { %v672_v25 = vsel %vm2209_vm3, %v667_v24, -1e+30  ;;  %v1881_v26 = vpop.f32.mrb[7].mxu1 }
 0x58a   :  { %v676_v27 = vsel %vm183_vm2, %v672_v25, -inf }
 0x58b   :  { %677 = vmax.xlane.f32.xlu1 %v676_v27 }
 0x59c   :  { %771 = vrot.lane.b32.xlu1 %v2189_v39, %s2098_s19 }
 0x59d   :  { %695 = vrot.lane.b32.xlu0 %v2191_v41, %s2098_s19 }
 0x5a0   :  { %860 = vrot.lane.b32.xlu1 %v2191_v41, %s2099_s20 }
 0x5a4   :  { %938 = vrot.lane.b32.xlu1 %v2189_v39, %s2099_s20 }
 0x5a8   :  { %936 = vrot.lane.b32.xlu1 %v2189_v39, %s2100_s21 }
 0x614   :  { %v675_v28 = vpop.xlane.xlu0 %674 }
 0x615   :  { %v679_v29 = vsub.f32 %v671_v20, %v675_v28 }
 0x617   :  { %v681_v30 = vmul.f32 1.442695, %v679_v29 }
 0x618   :  { %v696_v31 = vpop.permute.xlu0 %695  ;;  %v678_v32 = vpop.xlane.xlu1 %677 }
 0x619   :  { %2009 = vpow2.f32 %v681_v30  ;;  %v680_v33 = vsub.f32 %v672_v25, %v678_v32  ;;  %1883 = vmatpush3.msra.mxu0 %v696_v31 }
 0x61a   :  { %1892 = vmatprep.subr.mxu0 %v2092_v36 }
 0x61b   :  { %v683_v34 = vmul.f32 1.442695, %v680_v33 }
 0x61c   :  { %v772_v35 = vpop.permute.xlu1 %771 }
 0x61d   :  { %2011 = vpow2.f32 %v683_v34  ;;  %1888 = vmatpush3.msra.mxu1 %v772_v35 }
 0x61e   :  { %1897 = vmatprep.subr.mxu1 %v2092_v36 }
 0x620   :  { %v861_v45 = vpop.permute.xlu1 %860 }
 0x623   :  { %v2010_v37 = vpop.eup %2009 }
 0x624   :  { %v685_v38 = vsel %vm183_vm2, %v2010_v37, 0.0  ;;  %v939_v50 = vpop.permute.xlu1 %938 }
 0x625   :  { %686 = vadd.xlane.f32.xlu0 %v685_v38 }
 0x627   :  { %v2012_v40 = vpop.eup %2011 }
 0x628   :  { %v688_v42 = vsel %vm183_vm2, %v2012_v40, 0.0  ;;  %v937_v53 = vpop.permute.xlu1 %936 }
 0x629   :  { %689 = vadd.xlane.f32.xlu0 %v688_v42 }
 0x63f   :  { %858 = vrot.lane.b32.xlu0 %v2191_v41, %s2100_s21 }
 0x6b2   :  { %v687_v43 = vpop.xlane.xlu0 %686 }
 0x6b3   :  { %2013 = vrcp.f32 %v687_v43 }
 0x6b6   :  { %v690_v44 = vpop.xlane.xlu0 %689 }
 0x6b7   :  { %2015 = vrcp.f32 %v690_v44 }
 0x6ba   :  { %v859_v52 = vpop.permute.xlu0 %858 }
 0x6bd   :  { %v2014_v46 = vpop.eup %2013 }
 0x6be   :  { %v693_v48 = vmul.f32 %v2014_v46, %v2010_v37 }
 0x6c0   :  { %1885 = vmatmul.mubr.msk.f32.vlgmr.msra.gmra.mrb[6].mxu0 %vm183_vm2, %v693_v48 }
 0x6c1   :  { %v2016_v49 = vpop.eup %2015  ;;  %1893 = vmatpush3.xpose.msk.msra.mxu0 %vm183_vm2, %v861_v45  ;;  %1894 = vmatprep.mubr.msk.f32.mxu0 %vm2093_vm1, %v2092_v36 }
 0x6c2   :  { %v694_v51 = vmul.f32 %v2016_v49, %v2012_v40  ;;  %1902 = vmatprep.subr.mxu0 %v2092_v36 }
 0x6c4   :  { %1890 = vmatmul.mubr.msk.f32.vlgmr.msra.gmra.mrb[8].mxu1 %vm183_vm2, %v694_v51  ;;  %1895 = vmatmul.mubr.msk.f32.vlgmr.msra.gmra.mrb[8].mxu0 %vm183_vm2, %v859_v52 }
 0x6c5   :  { %1898 = vmatpush3.xpose.msk.msra.mxu1 %vm183_vm2, %v939_v50  ;;  %1899 = vmatprep.mubr.msk.f32.mxu1 %vm2093_vm1, %v2092_v36 }
 0x6c6   :  { %1907 = vmatprep.subr.mxu1 %v2092_v36  ;;  %1904 = vmatprep.mubr.msk.f32.mxu0 %vm2093_vm1, %v2092_v36 }
 0x6c8   :  { %1900 = vmatmul.mubr.msk.f32.vlgmr.msra.gmra.mrb[10].mxu1 %vm183_vm2, %v937_v53 }
 0x6c9   :  { %1909 = vmatprep.mubr.msk.f32.mxu1 %vm2093_vm1, %v2092_v36 }
 0x793   :  { %v2279_v54 = vpop.f32.mrb[6].mxu0 }
 0x794   :  { %v1886_v55 = vpop.f32.mrb[7].mxu0 }
 0x797   :  { %v2281_v56 = vpop.f32.mrb[8].mxu1  ;;  %v932_v57 = vpop.f32.mrb[8].mxu0 }
 0x798   :  { %v1014_v58 = vsel %vm2209_vm3, %v932_v57, -1e+30  ;;  %v1891_v59 = vpop.f32.mrb[9].mxu1  ;;  %v1896_v60 = vpop.f32.mrb[9].mxu0 }
 0x799   :  { %v1016_v61 = vsel %vm183_vm2, %v1014_v58, -inf }
 0x79a   :  { %1017 = vmax.xlane.f32.xlu0 %v1016_v61  ;;  %v46_v61 = vld [vmem:[%s2388_s3 + $0x8] sm:$0xff] }
 0x79b   :  { %v1010_v62 = vpop.f32.mrb[10].mxu1 }
 0x79c   :  { %v1015_v63 = vsel %vm2209_vm3, %v1010_v62, -1e+30  ;;  %v1901_v2 = vpop.f32.mrb[11].mxu1 }
 0x79d   :  { %v1019_v3 = vsel %vm183_vm2, %v1015_v63, -inf  ;;  %v48_v2 = vld [vmem:[%s2388_s3 + $0x18] sm:$0xff] }
 0x79e   :  { %1020 = vmax.xlane.f32.xlu1 %v1019_v3 }
 0x7af   :  { %1114 = vrot.lane.b32.xlu1 %v2189_v39, %s2101_s22 }
 0x7b0   :  { %1038 = vrot.lane.b32.xlu0 %v2191_v41, %s2101_s22 }
 0x7b3   :  { %1203 = vrot.lane.b32.xlu1 %v2191_v41, %s2102_s23 }
 0x7b7   :  { %1281 = vrot.lane.b32.xlu1 %v2189_v39, %s2102_s23 }
 0x7bb   :  { %1279 = vrot.lane.b32.xlu1 %v2189_v39, %s2103_s24 }
 0x827   :  { %v1018_v4 = vpop.xlane.xlu0 %1017 }
 0x828   :  { %v1022_v5 = vsub.f32 %v1014_v58, %v1018_v4 }
 0x82a   :  { %v1024_v6 = vmul.f32 1.442695, %v1022_v5 }
 0x82b   :  { %v1039_v7 = vpop.permute.xlu0 %1038  ;;  %v1021_v8 = vpop.xlane.xlu1 %1020 }
 0x82c   :  { %2017 = vpow2.f32 %v1024_v6  ;;  %v1023_v9 = vsub.f32 %v1015_v63, %v1021_v8  ;;  %1903 = vmatpush3.msra.mxu0 %v1039_v7  ;;  %v47_v63 = vld [vmem:[%s2388_s3 + $0x10] sm:$0xff] }
 0x82d   :  { %1912 = vmatprep.subr.mxu0 %v2092_v36  ;;  %v1966_v3 = vpack.c.bf16 %v48_v2, %v47_v63 }
 0x82e   :  { %v1026_v10 = vmul.f32 1.442695, %v1023_v9 }
 0x82f   :  { %v1115_v11 = vpop.permute.xlu1 %1114 }
 0x830   :  { %2019 = vpow2.f32 %v1026_v10  ;;  %1908 = vmatpush3.msra.mxu1 %v1115_v11 }
 0x831   :  { %1917 = vmatprep.subr.mxu1 %v2092_v36 }
 0x833   :  { %v1204_v18 = vpop.permute.xlu1 %1203 }
 0x836   :  { %v2018_v12 = vpop.eup %2017 }
 0x837   :  { %v1028_v13 = vsel %vm183_vm2, %v2018_v12, 0.0  ;;  %v1282_v22 = vpop.permute.xlu1 %1281 }
 0x838   :  { %1029 = vadd.xlane.f32.xlu0 %v1028_v13  ;;  %v35_v13 = vld [vmem:[%s2386_s1 + $0x8] sm:$0xff] }
 0x83a   :  { %v2020_v14 = vpop.eup %2019 }
 0x83b   :  { %v1031_v15 = vsel %vm183_vm2, %v2020_v14, 0.0  ;;  %v1280_v25 = vpop.permute.xlu1 %1279 }
 0x83c   :  { %1032 = vadd.xlane.f32.xlu0 %v1031_v15  ;;  %v1784_v15 = vld [vmem:[%s2388_s3 + $0x20] ss:$0 sm:$0xff] }
 0x852   :  { %1201 = vrot.lane.b32.xlu0 %v2191_v41, %s2103_s24 }
 0x8c5   :  { %v1030_v16 = vpop.xlane.xlu0 %1029 }
 0x8c6   :  { %2021 = vrcp.f32 %v1030_v16 }
 0x8c9   :  { %v1033_v17 = vpop.xlane.xlu0 %1032 }
 0x8ca   :  { %2023 = vrcp.f32 %v1033_v17 }
 0x8cd   :  { %v1202_v24 = vpop.permute.xlu0 %1201 }
 0x8d0   :  { %v2022_v19 = vpop.eup %2021 }
 0x8d1   :  { %v1036_v20 = vmul.f32 %v2022_v19, %v2018_v12  ;;  %v34_v12 = vld [vmem:[%s2386_s1] sm:$0xff] }
 0x8d3   :  { %1905 = vmatmul.mubr.msk.f32.vlgmr.msra.gmra.mrb[10].mxu0 %vm183_vm2, %v1036_v20 }
 0x8d4   :  { %v2024_v21 = vpop.eup %2023  ;;  %1913 = vmatpush3.xpose.msk.msra.mxu0 %vm183_vm2, %v1204_v18  ;;  %1914 = vmatprep.mubr.msk.f32.mxu0 %vm2093_vm1, %v2092_v36 }
 0x8d5   :  { %v1037_v23 = vmul.f32 %v2024_v21, %v2020_v14  ;;  %1922 = vmatprep.subr.mxu0 %v2092_v36  ;;  %v1970_v14 = vpack.c.bf16 %v35_v13, %v34_v12 }
 0x8d7   :  { %1910 = vmatmul.mubr.msk.f32.vlgmr.msra.gmra.mrb[12].mxu1 %vm183_vm2, %v1037_v23  ;;  %1915 = vmatmul.mubr.msk.f32.vlgmr.msra.gmra.mrb[12].mxu0 %vm183_vm2, %v1202_v24  ;;  %v37_v23 = vld [vmem:[%s2386_s1 + $0x18] sm:$0xff] }
 0x8d8   :  { %1918 = vmatpush3.xpose.msk.msra.mxu1 %vm183_vm2, %v1282_v22  ;;  %1919 = vmatprep.mubr.msk.f32.mxu1 %vm2093_vm1, %v2092_v36  ;;  %v36_v22 = vld [vmem:[%s2386_s1 + $0x10] sm:$0xff]  ;;  %s2107_s1 = smov [#allocation6]  }
 0x8d9   :  { %1927 = vmatprep.subr.mxu1 %v2092_v36  ;;  %1924 = vmatprep.mubr.msk.f32.mxu0 %vm2093_vm1, %v2092_v36 }
 0x8db   :  { %1920 = vmatmul.mubr.msk.f32.vlgmr.msra.gmra.mrb[14].mxu1 %vm183_vm2, %v1280_v25  ;;  %v1974_v25 = vpack.c.bf16 %v37_v23, %v36_v22 }
 0x8dc   :  { %1929 = vmatprep.mubr.msk.f32.mxu1 %vm2093_vm1, %v2092_v36 }
 0x9a6   :  { %v1110_v26 = vpop.f32.mrb[10].mxu0 }
 0x9a7   :  { %v1906_v27 = vpop.f32.mrb[11].mxu0 }
 0x9aa   :  { %v1186_v28 = vpop.f32.mrb[12].mxu1  ;;  %v1275_v29 = vpop.f32.mrb[12].mxu0 }
 0x9ab   :  { %v1357_v30 = vsel %vm2209_vm3, %v1275_v29, -1e+30  ;;  %v1911_v31 = vpop.f32.mrb[13].mxu1  ;;  %v1916_v32 = vpop.f32.mrb[13].mxu0 }
 0x9ac   :  { %v1359_v33 = vsel %vm183_vm2, %v1357_v30, -inf }
 0x9ad   :  { %1360 = vmax.xlane.f32.xlu0 %v1359_v33 }
 0x9ae   :  { %v1353_v34 = vpop.f32.mrb[14].mxu1 }
 0x9af   :  { %v1358_v35 = vsel %vm2209_vm3, %v1353_v34, -1e+30  ;;  %v1921_v37 = vpop.f32.mrb[15].mxu1 }
 0x9b0   :  { %v1362_v38 = vsel %vm183_vm2, %v1358_v35, -inf }
 0x9b1   :  { %1363 = vmax.xlane.f32.xlu1 %v1362_v38 }
 0x9c2   :  { %1457 = vrot.lane.b32.xlu1 %v2189_v39, %s2104_s27 }
 0x9c6   :  { %849 = vrot.lane.b32.xlu1 %v2279_v54, %s2091_s26 }
 0x9ca   :  { %851 = vrot.lane.b32.xlu1 %v2281_v56, %s2091_s26 }
 0x9ce   :  { %1194 = vrot.lane.b32.xlu1 %v1186_v28, %s2105_s28 }
 0xa3a   :  { %v1361_v36 = vpop.xlane.xlu0 %1360 }
 0xa3b   :  { %v1365_v40 = vsub.f32 %v1357_v30, %v1361_v36 }
 0xa3d   :  { %v1367_v42 = vmul.f32 1.442695, %v1365_v40 }
 0xa3e   :  { %v1364_v47 = vpop.xlane.xlu1 %1363 }
 0xa3f   :  { %2025 = vpow2.f32 %v1367_v42  ;;  %v1366_v43 = vsub.f32 %v1358_v35, %v1364_v47 }
 0xa41   :  { %v1369_v44 = vmul.f32 1.442695, %v1366_v43 }
 0xa42   :  { %v1458_v45 = vpop.permute.xlu1 %1457 }
 0xa43   :  { %2027 = vpow2.f32 %v1369_v44  ;;  %1928 = vmatpush3.msra.mxu1 %v1458_v45 }
 0xa44   :  { %1971 = vmatprep.subr.bf16.mxu1 %v1970_v14 }
 0xa46   :  { %v850_v39 = vpop.permute.xlu1 %849 }
 0xa47   :  { %856 = vst.msk [vmem:[#allocation2] sm:$0xff] %vm855_vm4, %v850_v39 }
 0xa49   :  { %v2026_v46 = vpop.eup %2025 }
 0xa4a   :  { %v852_v48 = vpop.permute.xlu1 %851  ;;  %v1371_v49 = vsel %vm183_vm2, %v2026_v46, 0.0 }
 0xa4b   :  { %857 = vst.msk [vmem:[#allocation2 + $0x8] sm:$0xff] %vm855_vm4, %v852_v48  ;;  %1372 = vadd.xlane.f32.xlu0 %v1371_v49 }
 0xa4d   :  { %v2028_v50 = vpop.eup %2027 }
 0xa4e   :  { %v1195_v51 = vpop.permute.xlu1 %1194  ;;  %v1374_v52 = vsel %vm183_vm2, %v2028_v50, 0.0 }
 0xa4f   :  { %1200 = vst.msk [vmem:[#allocation2 + $0x8] sm:$0xff] %vm1198_vm5, %v1195_v51  ;;  %1375 = vadd.xlane.f32.xlu0 %v1374_v52 }
 0xa65   :  { %1381 = vrot.lane.b32.xlu0 %v2191_v41, %s2104_s27  ;;  %v45_v41 = vld [vmem:[%s2388_s3] sm:$0xff]  ;;  %s1743_s3 = sshll.u32 %s2107_s1, 4  ;;  %s1744_s3 = int_to_ptr.vmem [resolvable:$true] %s1743_s3 }
 0xa66   :  { %v1962_v62 = vpack.c.bf16 %v46_v61, %v45_v41  ;;  %p2068_p9 = scmp.lt.s32.totalorder %s1744_s3, %s1744_s3 }
 0xa69   :  { %1192 = vrot.lane.b32.xlu0 %v1110_v26, %s2105_s28 }
 0xad8   :  { %v1373_v53 = vpop.xlane.xlu0 %1372 }
 0xad9   :  { %2029 = vrcp.f32 %v1373_v53 }
 0xadc   :  { %v1376_v54 = vpop.xlane.xlu0 %1375 }
 0xadd   :  { %2031 = vrcp.f32 %v1376_v54 }
 0xae0   :  { %v1382_v55 = vpop.permute.xlu0 %1381 }
 0xae1   :  { %1923 = vmatpush3.msra.mxu0 %v1382_v55 }
 0xae2   :  { %1963 = vmatprep.subr.bf16.mxu0 %v1962_v62 }
 0xae3   :  { %v2030_v56 = vpop.eup %2029 }
 0xae4   :  { %v1379_v57 = vmul.f32 %v2030_v56, %v2026_v46  ;;  %v1193_v58 = vpop.permute.xlu0 %1192 }
 0xae5   :  { %1199 = vst.msk [vmem:[#allocation2] sm:$0xff] %vm1198_vm5, %v1193_v58 }
 0xae6   :  { %1925 = vmatmul.mubr.msk.f32.vlgmr.msra.gmra.mrb[14].mxu0 %vm183_vm2, %v1379_v57 }
 0xae7   :  { %v2032_v59 = vpop.eup %2031  ;;  %1965 = vmatpush3.bf16.msra.mxu0 %v1962_v62 }
 0xae8   :  { %v1380_v60 = vmul.f32 %v2032_v59, %v2028_v50  ;;  %1967 = vmatprep.subr.bf16.mxu0 %v1966_v3 }
 0xaea   :  { %1930 = vmatmul.mubr.msk.f32.vlgmr.msra.gmra.mrb[16].mxu1 %vm183_vm2, %v1380_v60 }
 0xaeb   :  { %1969 = vmatpush3.bf16.msra.mxu0 %v1966_v3  ;;  %1973 = vmatpush3.bf16.msra.mxu1 %v1970_v14 }
 0xaec   :  { %1975 = vmatprep.subr.bf16.mxu1 %v1974_v25 }
 0xaef   :  { %1977 = vmatpush3.bf16.msra.mxu1 %v1974_v25 }
 0xbb9   :  { %v1453_v4 = vpop.f32.mrb[14].mxu0 }
 0xbba   :  { %1535 = vrot.lane.b32.xlu0 %v1453_v4, %s2106_s10  ;;  %v1926_v5 = vpop.f32.mrb[15].mxu0 }
 0xbbd   :  { %v1529_v6 = vpop.f32.mrb[16].mxu1 }
 0xbbe   :  { %1537 = vrot.lane.b32.xlu1 %v1529_v6, %s2106_s10  ;;  %v1931_v7 = vpop.f32.mrb[17].mxu1 }
 0xc2c   :  { %v1536_v8 = vpop.permute.xlu0 %1535 }
 0xc2d   :  { %1542 = vst.msk [vmem:[#allocation2] sm:$0xff] %vm1541_vm6, %v1536_v8 }
 0xc30   :  { %v1538_v9 = vpop.permute.xlu1 %1537 }
 0xc31   :  { %1543 = vst.msk [vmem:[#allocation2 + $0x8] sm:$0xff] %vm1541_vm6, %v1538_v9 }
 0xc34   :  { %v1544_v10 = vld [vmem:[#allocation2] sm:$0xff] }
 0xc35   :  { %1940 = vmatprep.mubr.msk.f32.mxu0 %vm50_vm0, %v1544_v10 }
 0xc38   :  { %v1545_v11 = vld [vmem:[#allocation2 + $0x8] sm:$0xff] }
 0xc39   :  { %1941 = vmatmul.mubr.msk.f32.vlgmr.msra.gmra.mrb[16].mxu0 %vm50_vm0, %v1545_v11 }
 0xd0c   :  { %v1942_v16 = vpop.f32.mrb[16].mxu0 }
 0xd0d   :  { %v1628_v17 = vadd.f32 %v1942_v16, %v1784_v15  ;;  %v1622_v18 = vpop.f32.mrb[17].mxu0 }
 0xd0e   :  { %v1623_v19 = vadd.f32 %v1784_v15, %v1622_v18 }
 0xd0f   :  { %v1788_v20 = vmul.f32 -1.442695, %v1628_v17 }
 0xd10   :  { %v1787_v21 = vmul.f32 -1.442695, %v1623_v19 }
 0xd11   :  { %2033 = vpow2.f32 %v1788_v20 }
 0xd12   :  { %2035 = vpow2.f32 %v1787_v21 }
 0xd1b   :  { %v2034_v24 = vpop.eup %2033 }
 0xd1c   :  { %v2036_v26 = vpop.eup %2035  ;;  %v1638_v27 = vadd.f32 1.0, %v2034_v24 }
 0xd1d   :  { %v1637_v28 = vadd.f32 1.0, %v2036_v26 }
 0xd1e   :  { %2037 = vrcp.f32 %v1638_v27 }
 0xd1f   :  { %2039 = vrcp.f32 %v1637_v28 }
 0xd28   :  { %v2038_v29 = vpop.eup %2037 }
 0xd29   :  { %v2040_v30 = vpop.eup %2039  ;;  %1647 = vrot.lane.b32.xlu1 %v2038_v29, %s2094_s16 }
 0xd2a   :  { %1645 = vrot.lane.b32.xlu0 %v2040_v30, %s2094_s16  ;;  %s2063_s16 = scalar_lea.vmem %s1744_s3, 256 }
 0xd2b   :  { %p2064_p8 = scmp.ne.s32.totalorder %s1744_s3, %s2063_s16  ;;  %p2069_p10 = scmp.lt.s32.totalorder %s2063_s16, %s2063_s16 }
 0xd2d   :  { %p2070_p11 = por %p2069_p10, %p2068_p9 }
 0xd2f   :  { %p2071_p12 = pnand %p2070_p11, %p2064_p8 }
 0xd9b   :  { %v1648_v31 = vpop.permute.xlu1 %1647 }
 0xd9c   :  { %v1646_v32 = vpop.permute.xlu0 %1645  ;;  %v1652_v34 = vmul.f32 %v1648_v31, %v1628_v17 }
 0xd9d   :  { %v1651_v33 = vmul.f32 %v1646_v32, %v1623_v19 }
 0xd9f   :  { %1951 = vmatprep.mubr.msk.f32.mxu1 %vm50_vm0, %v1651_v33 }
 0xda0   :  { %1952 = vmatmul.mubr.msk.f32.vlgmr.msra.gmra.mrb[18].mxu1 %vm50_vm0, %v1652_v34 }
 0xe73   :  { %v1953_v35 = vpop.f32.mrb[18].mxu1 }
 0xe74   :  { %v1735_v37 = vadd.f32 %v1953_v35, %v2150_v1  ;;  %v1725_v38 = vpop.f32.mrb[19].mxu1 }
 0xe75   :  { %v1734_v36 = vadd.f32 %v1725_v38, %v2148_v0 }
 0xe76   :  { %1737 = vst.msk [vmem:[#allocation6 + $0x8] sm:$0xff] %vm50_vm0, %v1735_v37 }
 0xe77   :  { %1736 = vst.msk [vmem:[#allocation6] sm:$0xff] %vm50_vm0, %v1734_v36 }
 0xe78   :  { %2074 = shalt.err (!%p2071_p12)
}
 0xe79   :  { %s2075_s23 = scalar_lea.hbm %s2389_s4, 256 }
 0xe7a   :  { %p2076_p13 = scmp.ne.s32.totalorder %s2389_s4, %s2075_s23  ;;  %p2079_p0 = scmp.lt.u32.totalorder %s2075_s23, %s2389_s4 }
 0xe7c   :  { %p2081_p1 = pnand %p2079_p0, %p2076_p13 }
 0xe7e   :  { %2084 = shalt.err (!%p2081_p1)
}
 0xe7f   :  { %1749 = dma.vmem_to_hbm [thread:$0]  %s1744_s3, 256, %s2389_s4, [#allocation5], %s2090_s25, %s2090_s25, %s2091_s26  }
 0xe80   :  { %2087 = dma.done.wait [#allocation5], 256  }
 0xe81   :  { %2088 = vsyncadd [#allocation5], 4294967040 }
 0xe82   :  { %1753 = vsyncpa [#allocation4], 1 }
 0xe83   :  { %1754 = vsyncpa [#allocation5], 1 }

</bundles_post_ra>
